<compile_context>
chip_gen: v5e
topology: v5e:2x2
jax: 0.10.0
libtpu: 0.0.40
codegen_flags: <defaults>
</compile_context>

<pallas_src>
import jax
import jax.numpy as jnp
from jax.experimental import pallas as pl
from jax.experimental.pallas import tpu as pltpu


def _round_up(x: int, m: int) -> int:
    return (x + m - 1) // m * m


def _make_rnn_kernel(num_layers: int, seq_len: int, batch_p: int):
    """Build the Pallas kernel body for a stacked tanh-RNN + FC head."""

    def kernel(*refs):
        # refs = [x_flat,
        #         (w_ih_T, w_hh_T, bias) * num_layers,
        #         w_fc_T, b_fc,
        #         out_ref,
        #         seq_scratch]
        x_ref = refs[0]                                   # (T*Bp, Dp) f32
        layer_refs = refs[1 : 1 + 3 * num_layers]
        w_fc_ref = refs[1 + 3 * num_layers]               # (Hp, Op)
        b_fc_ref = refs[2 + 3 * num_layers]               # (1, Op) f32
        out_ref = refs[3 + 3 * num_layers]                # (Bp, Op) f32
        seq_ref = refs[4 + 3 * num_layers]                # VMEM (T*Bp, Hp) f32

        h_last = None
        for l in range(num_layers):
            w_ih_t = layer_refs[3 * l][...]      # (Din_p, Hp) contraction-major
            w_hh_t = layer_refs[3 * l + 1][...]  # (Hp, Hp)    contraction-major
            bias = layer_refs[3 * l + 2][...]    # (1, Hp) f32 (= b_ih + b_hh)
            hp = w_hh_t.shape[1]

            # Input projection for ALL time steps as one big MXU matmul.
            # (Reads the previous layer's full sequence before overwriting it.)
            xin = x_ref[...] if l == 0 else seq_ref[...]
            seq_ref[...] = (
                jnp.dot(xin.astype(w_ih_t.dtype), w_ih_t,
                        preferred_element_type=jnp.float32)
                + bias
            )

            is_last_layer = l == num_layers - 1

            # Sequential recurrence: only the (Bp,Hp)x(Hp,Hp) matmul per step.
            def step(t, h_prev, *, w_hh_t=w_hh_t, store=not is_last_layer):
                base = pl.multiple_of(t * batch_p, batch_p)
                p = seq_ref[pl.ds(base, batch_p), :]          # precomputed proj
                h_new = jnp.tanh(
                    p
                    + jnp.dot(h_prev.astype(w_hh_t.dtype), w_hh_t,
                              preferred_element_type=jnp.float32)
                )
                if store:  # next layer reads this sequence as its input
                    seq_ref[pl.ds(base, batch_p), :] = h_new
                return h_new

            h0 = jnp.zeros((batch_p, hp), jnp.float32)
            h_last = jax.lax.fori_loop(0, seq_len, step, h0)

        # Final Linear on the last time step's hidden state of the last layer.
        out = (
            jnp.dot(h_last.astype(w_fc_ref.dtype), w_fc_ref[...],
                    preferred_element_type=jnp.float32)
            + b_fc_ref[...]
        )
        out_ref[...] = out.astype(out_ref.dtype)

    return kernel


def rnn_forward(x, params, *, hidden_dim: int, layer_dim: int, output_dim: int,
                mxu_dtype=jnp.float32):
    """x: (batch, seq, input_dim)  ->  (batch, output_dim)."""
    B, T, D = x.shape
    H, O, L = hidden_dim, output_dim, layer_dim
    Bp = _round_up(B, 8)      # sublane multiple
    Dp = _round_up(D, 128)    # lane multiple
    Hp = _round_up(H, 128)
    Op = _round_up(O, 128)

    # Glue: time-major + zero padding; flatten (T, Bp) so the per-layer input
    # projection is a single 2-D matmul and time step t is rows [t*Bp,(t+1)*Bp).
    x_tm = jnp.transpose(x.astype(jnp.float32), (1, 0, 2))          # (T, B, D)
    x_tm = jnp.pad(x_tm, ((0, 0), (0, Bp - B), (0, Dp - D)))
    x_flat = x_tm.reshape(T * Bp, Dp)

    flat_params = []
    for l in range(L):
        w_ih, w_hh, b_ih, b_hh = params[f"layer_{l}"]
        d_in = D if l == 0 else H
        d_in_p = Dp if l == 0 else Hp
        w_ih_t = jnp.zeros((d_in_p, Hp), jnp.float32).at[:d_in, :H].set(
            jnp.asarray(w_ih, jnp.float32).T)
        w_hh_t = jnp.zeros((Hp, Hp), jnp.float32).at[:H, :H].set(
            jnp.asarray(w_hh, jnp.float32).T)
        bias = jnp.zeros((1, Hp), jnp.float32).at[:, :H].set(
            (jnp.asarray(b_ih, jnp.float32)
             + jnp.asarray(b_hh, jnp.float32)).reshape(1, H))
        flat_params += [w_ih_t.astype(mxu_dtype), w_hh_t.astype(mxu_dtype), bias]

    w_fc, b_fc = params["fc"]
    w_fc_t = jnp.zeros((Hp, Op), jnp.float32).at[:H, :O].set(
        jnp.asarray(w_fc, jnp.float32).T)
    b_fc_p = jnp.zeros((1, Op), jnp.float32).at[:, :O].set(
        jnp.asarray(b_fc, jnp.float32).reshape(1, O))
    flat_params += [w_fc_t.astype(mxu_dtype), b_fc_p]

    vmem_spec = pl.BlockSpec(memory_space=pltpu.MemorySpace.VMEM)
    n_inputs = 1 + len(flat_params)

    # No grid -> everything is single-buffered: VMEM = inputs + output + scratch.
    vmem_bytes = (
        x_flat.size * x_flat.dtype.itemsize
        + sum(int(a.size) * a.dtype.itemsize for a in flat_params)
        + Bp * Op * 4
        + T * Bp * Hp * 4
    )
    vmem_limit = min(max(2 * int(vmem_bytes) + (4 << 20), 16 << 20), 64 << 20)

    out_p = pl.pallas_call(
        _make_rnn_kernel(L, T, Bp),
        out_shape=jax.ShapeDtypeStruct((Bp, Op), jnp.float32),
        in_specs=[vmem_spec] * n_inputs,
        out_specs=vmem_spec,
        scratch_shapes=[pltpu.VMEM((T * Bp, Hp), jnp.float32)],
        compiler_params=pltpu.CompilerParams(vmem_limit_bytes=vmem_limit),
    )(x_flat, *flat_params)

    # TODO(synk): for v7x megacore with large batch, add a leading batch-shard
    #             grid axis marked "parallel"; the batch=2 demo stays on 1 core.
    return out_p[:B, :O]


def init_params(key, input_dim, hidden_dim, layer_dim, output_dim):
    """Deterministic PyTorch-style uniform(-1/sqrt(H), 1/sqrt(H)) init."""
    params = {}
    bound = 1.0 / jnp.sqrt(jnp.float32(hidden_dim))
    for l in range(layer_dim):
        d_in = input_dim if l == 0 else hidden_dim
        key, k1, k2, k3, k4 = jax.random.split(key, 5)
        w_ih = jax.random.uniform(k1, (hidden_dim, d_in), jnp.float32, -bound, bound)
        w_hh = jax.random.uniform(k2, (hidden_dim, hidden_dim), jnp.float32, -bound, bound)
        b_ih = jax.random.uniform(k3, (1, hidden_dim), jnp.float32, -bound, bound)
        b_hh = jax.random.uniform(k4, (1, hidden_dim), jnp.float32, -bound, bound)
        params[f"layer_{l}"] = (w_ih, w_hh, b_ih, b_hh)
    key, k1, k2 = jax.random.split(key, 3)
    w_fc = jax.random.uniform(k1, (output_dim, hidden_dim), jnp.float32, -bound, bound)
    b_fc = jax.random.uniform(k2, (1, output_dim), jnp.float32, -bound, bound)
    params["fc"] = (w_fc, b_fc)
    return params


def rnn_reference(x, params, *, hidden_dim, layer_dim, output_dim):
    """Pure-JAX reference of the same forward pass (for correctness check)."""
    B, T, D = x.shape
    h = jnp.zeros((layer_dim, B, hidden_dim), jnp.float32)
    inp_seq = x.astype(jnp.float32)
    for l in range(layer_dim):
        w_ih, w_hh, b_ih, b_hh = params[f"layer_{l}"]

        def step(h_prev, x_t):
            h_new = jnp.tanh(x_t @ w_ih.T + h_prev @ w_hh.T + b_ih + b_hh)
            return h_new, h_new

        _, outs = jax.lax.scan(step, h[l], jnp.transpose(inp_seq, (1, 0, 2)))
        inp_seq = jnp.transpose(outs, (1, 0, 2))  # (B, T, H)
    last = inp_seq[:, -1, :]
    w_fc, b_fc = params["fc"]
    return last @ w_fc.T + b_fc


if __name__ == "__main__":
    # Small shapes consistent with the module's forward.
    batch, seq_len = 2, 8
    input_dim, hidden_dim, layer_dim, output_dim = 16, 32, 2, 4
    dropout_prob = 0.1  # inactive at inference

    key = jax.random.PRNGKey(0)
    key, kx = jax.random.split(key)
    x = jax.random.normal(kx, (batch, seq_len, input_dim), jnp.float32)
    params = init_params(key, input_dim, hidden_dim, layer_dim, output_dim)

    ref = rnn_reference(
        x, params, hidden_dim=hidden_dim, layer_dim=layer_dim, output_dim=output_dim
    )

    # f32 MXU path (bit-exact class of accuracy vs. reference).
    out = rnn_forward(
        x, params, hidden_dim=hidden_dim, layer_dim=layer_dim, output_dim=output_dim
    )
    out = jax.block_until_ready(out)
    assert out.shape == (batch, output_dim), out.shape
    assert jnp.allclose(out, ref, atol=1e-5, rtol=1e-5), (out, ref)

    # bf16 MXU operands (f32 accumulation / f32 state) — looser tolerance.
    out_bf16 = rnn_forward(
        x, params, hidden_dim=hidden_dim, layer_dim=layer_dim,
        output_dim=output_dim, mxu_dtype=jnp.bfloat16,
    )
    out_bf16 = jax.block_until_ready(out_bf16)
    assert jnp.allclose(out_bf16, ref, atol=1e-1, rtol=1e-1), (out_bf16, ref)

    print("KERNEL_OK")
</pallas_src>

<mosaic_0001>
module attributes {stable_mosaic.version = 11 : i64} {
  func.func @kernel(%arg0: memref<64x128xf32, #tpu.memory_space<vmem>>, %arg1: memref<128x128xf32, #tpu.memory_space<vmem>>, %arg2: memref<128x128xf32, #tpu.memory_space<vmem>>, %arg3: memref<1x128xf32, #tpu.memory_space<vmem>>, %arg4: memref<128x128xf32, #tpu.memory_space<vmem>>, %arg5: memref<128x128xf32, #tpu.memory_space<vmem>>, %arg6: memref<1x128xf32, #tpu.memory_space<vmem>>, %arg7: memref<128x128xf32, #tpu.memory_space<vmem>>, %arg8: memref<1x128xf32, #tpu.memory_space<vmem>>, %arg9: memref<8x128xf32, #tpu.memory_space<vmem>>, %arg10: memref<64x128xf32, #tpu.memory_space<vmem>>) attributes {dimension_semantics = [], scalar_prefetch = 0 : i64, scratch_operands = 1 : i64, tpu.core_type = #tpu.core_type<tc>} {
    %c0 = arith.constant 0 : index
    %c0_0 = arith.constant 0 : index
    %0 = vector.load %arg1[%c0, %c0_0] : memref<128x128xf32, #tpu.memory_space<vmem>>, vector<128x128xf32>
    %c0_1 = arith.constant 0 : index
    %c0_2 = arith.constant 0 : index
    %1 = vector.load %arg2[%c0_1, %c0_2] : memref<128x128xf32, #tpu.memory_space<vmem>>, vector<128x128xf32>
    %c0_3 = arith.constant 0 : index
    %c0_4 = arith.constant 0 : index
    %2 = vector.load %arg3[%c0_3, %c0_4] : memref<1x128xf32, #tpu.memory_space<vmem>>, vector<1x128xf32>
    %c0_5 = arith.constant 0 : index
    %c0_6 = arith.constant 0 : index
    %3 = vector.load %arg0[%c0_5, %c0_6] : memref<64x128xf32, #tpu.memory_space<vmem>>, vector<64x128xf32>
    %cst = arith.constant dense<0.000000e+00> : vector<64x128xf32>
    %4 = tpu.matmul %3, %0, %cst {dimension_numbers = #tpu.dot_dimension_numbers<[1], [0], [0], [1], [0, 0, 1, 1], [], []>} : vector<64x128xf32>, vector<128x128xf32>, vector<64x128xf32> -> vector<64x128xf32>
    %5 = vector.broadcast %2 : vector<1x128xf32> to vector<64x128xf32>
    %6 = arith.addf %4, %5 : vector<64x128xf32>
    %c0_7 = arith.constant 0 : index
    %c0_8 = arith.constant 0 : index
    %7 = vector.load %arg10[%c0_7, %c0_8] : memref<64x128xf32, #tpu.memory_space<vmem>>, vector<64x128xf32>
    tpu.vector_store %arg10[%c0_7, %c0_8], %6 {strides = array<i32>} : memref<64x128xf32, #tpu.memory_space<vmem>>, vector<64x128xf32>,
    %cst_9 = arith.constant 0.000000e+00 : f32
    %8 = vector.broadcast %cst_9 : f32 to vector<8x128xf32>
    %c0_i32 = arith.constant 0 : i32
    %c8_i32 = arith.constant 8 : i32
    %9 = arith.addi %c0_i32, %c8_i32 : i32
    %c1_i32 = arith.constant 1 : i32
    %10 = scf.for %arg11 = %c0_i32 to %9 step %c1_i32 iter_args(%arg12 = %8) -> (vector<8x128xf32>)  : i32 {
      %c8_i32_34 = arith.constant 8 : i32
      %28 = arith.muli %arg11, %c8_i32_34 : i32
      %29 = tpu.assume_multiple %28, 8 : i32
      %30 = arith.index_cast %29 : i32 to index
      %c0_35 = arith.constant 0 : index
      %31 = vector.load %arg10[%30, %c0_35] : memref<64x128xf32, #tpu.memory_space<vmem>>, vector<8x128xf32>
      %cst_36 = arith.constant dense<0.000000e+00> : vector<8x128xf32>
      %32 = tpu.matmul %arg12, %1, %cst_36 {dimension_numbers = #tpu.dot_dimension_numbers<[1], [0], [0], [1], [0, 0, 1, 1], [], []>} : vector<8x128xf32>, vector<128x128xf32>, vector<8x128xf32> -> vector<8x128xf32>
      %33 = arith.addf %31, %32 : vector<8x128xf32>
      %34 = math.tanh %33 : vector<8x128xf32>
      %35 = arith.index_cast %29 : i32 to index
      %c0_37 = arith.constant 0 : index
      %36 = vector.load %arg10[%35, %c0_37] : memref<64x128xf32, #tpu.memory_space<vmem>>, vector<8x128xf32>
      tpu.vector_store %arg10[%35, %c0_37], %34 {strides = array<i32>} : memref<64x128xf32, #tpu.memory_space<vmem>>, vector<8x128xf32>,
      scf.yield %34 : vector<8x128xf32>
    }
    %c8_i32_10 = arith.constant 8 : i32
    %c0_11 = arith.constant 0 : index
    %c0_12 = arith.constant 0 : index
    %11 = vector.load %arg4[%c0_11, %c0_12] : memref<128x128xf32, #tpu.memory_space<vmem>>, vector<128x128xf32>
    %c0_13 = arith.constant 0 : index
    %c0_14 = arith.constant 0 : index
    %12 = vector.load %arg5[%c0_13, %c0_14] : memref<128x128xf32, #tpu.memory_space<vmem>>, vector<128x128xf32>
    %c0_15 = arith.constant 0 : index
    %c0_16 = arith.constant 0 : index
    %13 = vector.load %arg6[%c0_15, %c0_16] : memref<1x128xf32, #tpu.memory_space<vmem>>, vector<1x128xf32>
    %c0_17 = arith.constant 0 : index
    %c0_18 = arith.constant 0 : index
    %14 = vector.load %arg10[%c0_17, %c0_18] : memref<64x128xf32, #tpu.memory_space<vmem>>, vector<64x128xf32>
    %cst_19 = arith.constant dense<0.000000e+00> : vector<64x128xf32>
    %15 = tpu.matmul %14, %11, %cst_19 {dimension_numbers = #tpu.dot_dimension_numbers<[1], [0], [0], [1], [0, 0, 1, 1], [], []>} : vector<64x128xf32>, vector<128x128xf32>, vector<64x128xf32> -> vector<64x128xf32>
    %16 = vector.broadcast %13 : vector<1x128xf32> to vector<64x128xf32>
    %17 = arith.addf %15, %16 : vector<64x128xf32>
    %c0_20 = arith.constant 0 : index
    %c0_21 = arith.constant 0 : index
    %18 = vector.load %arg10[%c0_20, %c0_21] : memref<64x128xf32, #tpu.memory_space<vmem>>, vector<64x128xf32>
    tpu.vector_store %arg10[%c0_20, %c0_21], %17 {strides = array<i32>} : memref<64x128xf32, #tpu.memory_space<vmem>>, vector<64x128xf32>,
    %cst_22 = arith.constant 0.000000e+00 : f32
    %19 = vector.broadcast %cst_22 : f32 to vector<8x128xf32>
    %c0_i32_23 = arith.constant 0 : i32
    %c8_i32_24 = arith.constant 8 : i32
    %20 = arith.addi %c0_i32_23, %c8_i32_24 : i32
    %c1_i32_25 = arith.constant 1 : i32
    %21 = scf.for %arg11 = %c0_i32_23 to %20 step %c1_i32_25 iter_args(%arg12 = %19) -> (vector<8x128xf32>)  : i32 {
      %c8_i32_34 = arith.constant 8 : i32
      %28 = arith.muli %arg11, %c8_i32_34 : i32
      %29 = tpu.assume_multiple %28, 8 : i32
      %30 = arith.index_cast %29 : i32 to index
      %c0_35 = arith.constant 0 : index
      %31 = vector.load %arg10[%30, %c0_35] : memref<64x128xf32, #tpu.memory_space<vmem>>, vector<8x128xf32>
      %cst_36 = arith.constant dense<0.000000e+00> : vector<8x128xf32>
      %32 = tpu.matmul %arg12, %12, %cst_36 {dimension_numbers = #tpu.dot_dimension_numbers<[1], [0], [0], [1], [0, 0, 1, 1], [], []>} : vector<8x128xf32>, vector<128x128xf32>, vector<8x128xf32> -> vector<8x128xf32>
      %33 = arith.addf %31, %32 : vector<8x128xf32>
      %34 = math.tanh %33 : vector<8x128xf32>
      scf.yield %34 : vector<8x128xf32>
    }
    %c8_i32_26 = arith.constant 8 : i32
    %c0_27 = arith.constant 0 : index
    %c0_28 = arith.constant 0 : index
    %22 = vector.load %arg7[%c0_27, %c0_28] : memref<128x128xf32, #tpu.memory_space<vmem>>, vector<128x128xf32>
    %cst_29 = arith.constant dense<0.000000e+00> : vector<8x128xf32>
    %23 = tpu.matmul %21, %22, %cst_29 {dimension_numbers = #tpu.dot_dimension_numbers<[1], [0], [0], [1], [0, 0, 1, 1], [], []>} : vector<8x128xf32>, vector<128x128xf32>, vector<8x128xf32> -> vector<8x128xf32>
    %c0_30 = arith.constant 0 : index
    %c0_31 = arith.constant 0 : index
    %24 = vector.load %arg8[%c0_30, %c0_31] : memref<1x128xf32, #tpu.memory_space<vmem>>, vector<1x128xf32>
    %25 = vector.broadcast %24 : vector<1x128xf32> to vector<8x128xf32>
    %26 = arith.addf %23, %25 : vector<8x128xf32>
    %c0_32 = arith.constant 0 : index
    %c0_33 = arith.constant 0 : index
    %27 = vector.load %arg9[%c0_32, %c0_33] : memref<8x128xf32, #tpu.memory_space<vmem>>, vector<8x128xf32>
    tpu.vector_store %arg9[%c0_32, %c0_33], %26 {strides = array<i32>} : memref<8x128xf32, #tpu.memory_space<vmem>>, vector<8x128xf32>,
    return
  }
}

</mosaic_0001>

<bundles_post_ra>
// kernel: tpu_custom_call.1
= control target key start
LH: loop header
LB: loop body
LE: loop exit
PB: predicated region body
PF: predicated region fallthrough
CT: control target
= control target key end

     0   :  { %14 = vsyncpa [#allocation4], 0  ;;  %s1032_s0 = inlined_call_operand.hbm [shape: f32[64,128], index: 0, kind: input, shape index: {}]   ;;  %s1033_s1 = inlined_call_operand.hbm [shape: f32[128,128], index: 1, kind: input, shape index: {}]   ;;  %s1034_s2 = inlined_call_operand.hbm [shape: f32[128,128], index: 2, kind: input, shape index: {}]   ;;  %s1035_s3 = inlined_call_operand.vmem [shape: f32[1,128], index: 3, kind: input, shape index: {}]   ;;  %s1036_s4 = inlined_call_operand.hbm [shape: f32[128,128], index: 4, kind: input, shape index: {}]   ;;  %s1037_s5 = inlined_call_operand.hbm [shape: f32[128,128], index: 5, kind: input, shape index: {}]   ;;  %s1038_s6 = inlined_call_operand.vmem [shape: f32[1,128], index: 6, kind: input, shape index: {}]   ;;  %s1039_s7 = inlined_call_operand.hbm [shape: f32[128,128], index: 7, kind: input, shape index: {}]   ;;  %s1040_s8 = inlined_call_operand.vmem [shape: f32[1,128], index: 8, kind: input, shape index: {}]   ;;  %s1041_s9 = inlined_call_operand.hbm [shape: f32[8,128], index: 9, kind: output, shape index: {}]  }
   0x1   :  { %15 = vsyncpa [#allocation7], 0 }
   0x2   :  { %16 = vsyncpa [#allocation10], 0 }
   0x3   :  { %17 = vsyncpa [#allocation13], 0 }
   0x4   :  { %18 = vsyncpa [#allocation5], 0  ;;  %s36_s11 = sshll.u32 %s1033_s1, 4  ;;  %s815_s12 = smov [#allocation6]   ;;  %s37_s11 = int_to_ptr.hbm [resolvable:$true] %s36_s11 }
   0x5   :  { %s38_s13 = sshll.u32 %s815_s12, 4  ;;  %s64_s16 = sshll.u32 %s1036_s4, 4  ;;  %s39_s13 = int_to_ptr.vmem [resolvable:$true] %s38_s13  ;;  %s65_s16 = int_to_ptr.hbm [resolvable:$true] %s64_s16 }
   0x6   :  { %s816_s17 = smov 128   ;;  %s817_s18 = smov 8  }
   0x7   :  { %44 = dma.hbm_to_vmem [thread:$0]  %s37_s11, 2048, %s39_s13, [#allocation7], %s816_s17, %s816_s17, %s817_s18  }
   0x8   :  { %s818_s19 = smov [#allocation9]   ;;  %s23_s1 = sshll.u32 %s1032_s0, 4  ;;  %s24_s1 = int_to_ptr.hbm [resolvable:$true] %s23_s1 }
   0x9   :  { %s66_s20 = sshll.u32 %s818_s19, 4  ;;  %s49_s24 = sshll.u32 %s1034_s2, 4  ;;  %s67_s20 = int_to_ptr.vmem [resolvable:$true] %s66_s20  ;;  %s50_s24 = int_to_ptr.hbm [resolvable:$true] %s49_s24 }
   0xa   :  { %72 = dma.hbm_to_vmem [thread:$0]  %s65_s16, 2048, %s67_s20, [#allocation10], %s816_s17, %s816_s17, %s817_s18  }
   0xb   :  { %s819_s25 = smov [#allocation3]   ;;  %s820_s27 = smov [#allocation8]  }
   0xc   :  { %s25_s26 = sshll.u32 %s819_s25, 4  ;;  %s51_s0 = sshll.u32 %s820_s27, 4  ;;  %s26_s26 = int_to_ptr.vmem [resolvable:$true] %s25_s26  ;;  %s52_s0 = int_to_ptr.vmem [resolvable:$true] %s51_s0 }
   0xd   :  { %31 = dma.hbm_to_vmem [thread:$0]  %s24_s1, 1024, %s26_s26, [#allocation4], %s816_s17, %s816_s17, %s817_s18  }
   0xe   :  { %s77_s30 = sshll.u32 %s1037_s5, 4  ;;  %s92_s11 = sshll.u32 %s1039_s7, 4  ;;  %s78_s30 = int_to_ptr.hbm [resolvable:$true] %s77_s30  ;;  %s93_s11 = int_to_ptr.hbm [resolvable:$true] %s92_s11 }
   0xf   :  { %57 = dma.hbm_to_vmem [thread:$0]  %s50_s24, 2048, %s52_s0, [#allocation7], %s816_s17, %s816_s17, %s817_s18  }
  0x10   :  { %s821_s12 = smov [#allocation11]   ;;  %s822_s14 = smov [#allocation12]  }
  0x11   :  { %s79_s13 = sshll.u32 %s821_s12, 4  ;;  %s94_s5 = sshll.u32 %s822_s14, 4  ;;  %s80_s13 = int_to_ptr.vmem [resolvable:$true] %s79_s13  ;;  %s95_s5 = int_to_ptr.vmem [resolvable:$true] %s94_s5 }
  0x12   :  { %85 = dma.hbm_to_vmem [thread:$0]  %s78_s30, 2048, %s80_s13, [#allocation10], %s816_s17, %s816_s17, %s817_s18  }
  0x13   :  { %100 = dma.hbm_to_vmem [thread:$0]  %s93_s11, 2048, %s95_s5, [#allocation13], %s816_s17, %s816_s17, %s817_s18  }
  0x14   :  { %789 = dma.done.wait [#allocation4], 1024  }
  0x15   :  { %790 = vsyncadd [#allocation4], 4294966272 }
  0x16   :  { %791 = dma.done.wait [#allocation7], 4096  }
  0x17   :  { %792 = vsyncadd [#allocation7], 4294963200 }
  0x18   :  { %793 = dma.done.wait [#allocation10], 4096  }
  0x19   :  { %794 = vsyncadd [#allocation10], 4294963200 }
  0x1a   :  { %795 = dma.done.wait [#allocation13], 2048  }
  0x1b   :  { %796 = vsyncadd [#allocation13], 4294965248  ;;  %v910_v0 = vld [vmem:[#allocation8] sm:$0xff]  ;;  %v912_v1 = vld [vmem:[#allocation8 + $0x8] sm:$0xff]  ;;  %v799_v57 = vmov 0.0  }
  0x1c   :  { %v914_v2 = vld [vmem:[#allocation8 + $0x10] sm:$0xff]  ;;  %v916_v3 = vld [vmem:[#allocation8 + $0x18] sm:$0xff]  ;;  %v918_v4 = vld [vmem:[#allocation8 + $0x20] sm:$0xff] }
  0x1d   :  { %v920_v5 = vld [vmem:[#allocation8 + $0x28] sm:$0xff]  ;;  %v922_v6 = vld [vmem:[#allocation8 + $0x30] sm:$0xff]  ;;  %v924_v7 = vld [vmem:[#allocation8 + $0x38] sm:$0xff] }
  0x1e   :  { %v926_v8 = vld [vmem:[#allocation8 + $0x40] sm:$0xff]  ;;  %v928_v9 = vld [vmem:[#allocation8 + $0x48] sm:$0xff]  ;;  %v930_v10 = vld [vmem:[#allocation8 + $0x50] sm:$0xff] }
  0x1f   :  { %v932_v11 = vld [vmem:[#allocation8 + $0x58] sm:$0xff]  ;;  %v934_v12 = vld [vmem:[#allocation8 + $0x60] sm:$0xff]  ;;  %v936_v13 = vld [vmem:[#allocation8 + $0x68] sm:$0xff] }
  0x20   :  { %v938_v14 = vld [vmem:[#allocation8 + $0x70] sm:$0xff]  ;;  %v940_v15 = vld [vmem:[#allocation8 + $0x78] sm:$0xff]  ;;  %v140_v18 = vld [vmem:[#allocation6 + $0x68] sm:$0xff] }
  0x21   :  { %v142_v16 = vld [vmem:[#allocation6 + $0x78] sm:$0xff]  ;;  %v141_v17 = vld [vmem:[#allocation6 + $0x70] sm:$0xff]  ;;  %v139_v19 = vld [vmem:[#allocation6 + $0x60] sm:$0xff] }
  0x22   :  { %462 = vmatpush.msra.mxu2 %v142_v16  ;;  %463 = vmatpush.msra.mxu3 %v142_v16  ;;  %v138_v20 = vld [vmem:[#allocation6 + $0x58] sm:$0xff]  ;;  %v137_v21 = vld [vmem:[#allocation6 + $0x50] sm:$0xff]  ;;  %v136_v22 = vld [vmem:[#allocation6 + $0x48] sm:$0xff] }
  0x23   :  { %171 = vmatpush.msra.mxu0 %v142_v16  ;;  %461 = vmatpush.msra.mxu1 %v142_v16  ;;  %v135_v23 = vld [vmem:[#allocation6 + $0x40] sm:$0xff]  ;;  %v134_v24 = vld [vmem:[#allocation6 + $0x38] sm:$0xff]  ;;  %v133_v25 = vld [vmem:[#allocation6 + $0x30] sm:$0xff] }
  0x24   :  { %465 = vmatpush.msra.mxu2 %v141_v17  ;;  %466 = vmatpush.msra.mxu3 %v141_v17  ;;  %v132_v26 = vld [vmem:[#allocation6 + $0x28] sm:$0xff]  ;;  %v131_v27 = vld [vmem:[#allocation6 + $0x20] sm:$0xff]  ;;  %v130_v28 = vld [vmem:[#allocation6 + $0x18] sm:$0xff] }
  0x25   :  { %172 = vmatpush.msra.mxu0 %v141_v17  ;;  %464 = vmatpush.msra.mxu1 %v141_v17  ;;  %v129_v29 = vld [vmem:[#allocation6 + $0x10] sm:$0xff]  ;;  %v128_v30 = vld [vmem:[#allocation6 + $0x8] sm:$0xff]  ;;  %v127_v31 = vld [vmem:[#allocation6] sm:$0xff] }
  0x26   :  { %468 = vmatpush.msra.mxu2 %v140_v18  ;;  %469 = vmatpush.msra.mxu3 %v140_v18  ;;  %v164_v32 = vld [vmem:[#allocation3 + $0x20] sm:$0xff]  ;;  %v166_v33 = vld [vmem:[#allocation3 + $0x30] sm:$0xff]  ;;  %v165_v36 = vld [vmem:[#allocation3 + $0x28] sm:$0xff] }
  0x27   :  { %173 = vmatpush.msra.mxu0 %v140_v18  ;;  %467 = vmatpush.msra.mxu1 %v140_v18  ;;  %v160_v34 = vld [vmem:[#allocation3] sm:$0xff]  ;;  %v162_v35 = vld [vmem:[#allocation3 + $0x10] sm:$0xff]  ;;  %v167_v37 = vld [vmem:[#allocation3 + $0x38] sm:$0xff] }
  0x28   :  { %471 = vmatpush.msra.mxu2 %v139_v19  ;;  %472 = vmatpush.msra.mxu3 %v139_v19  ;;  %v161_v38 = vld [vmem:[#allocation3 + $0x8] sm:$0xff]  ;;  %v163_v39 = vld [vmem:[#allocation3 + $0x18] sm:$0xff]  ;;  %v598_v40 = vld [vmem:[%s1035_s3] ss:$0 sm:$0xff]  ;;  %s945_s3 = smov 0  }
  0x29   :  { %174 = vmatpush.msra.mxu0 %v139_v19  ;;  %470 = vmatpush.msra.mxu1 %v139_v19 }
  0x2a   :  { %474 = vmatpush.msra.mxu2 %v138_v20  ;;  %475 = vmatpush.msra.mxu3 %v138_v20 }
  0x2b   :  { %175 = vmatpush.msra.mxu0 %v138_v20  ;;  %473 = vmatpush.msra.mxu1 %v138_v20 }
  0x2c   :  { %477 = vmatpush.msra.mxu2 %v137_v21  ;;  %478 = vmatpush.msra.mxu3 %v137_v21 }
  0x2d   :  { %176 = vmatpush.msra.mxu0 %v137_v21  ;;  %476 = vmatpush.msra.mxu1 %v137_v21 }
  0x2e   :  { %480 = vmatpush.msra.mxu2 %v136_v22  ;;  %481 = vmatpush.msra.mxu3 %v136_v22 }
  0x2f   :  { %177 = vmatpush.msra.mxu0 %v136_v22  ;;  %479 = vmatpush.msra.mxu1 %v136_v22 }
  0x30   :  { %483 = vmatpush.msra.mxu2 %v135_v23  ;;  %484 = vmatpush.msra.mxu3 %v135_v23 }
  0x31   :  { %178 = vmatpush.msra.mxu0 %v135_v23  ;;  %482 = vmatpush.msra.mxu1 %v135_v23 }
  0x32   :  { %486 = vmatpush.msra.mxu2 %v134_v24  ;;  %487 = vmatpush.msra.mxu3 %v134_v24 }
  0x33   :  { %179 = vmatpush.msra.mxu0 %v134_v24  ;;  %485 = vmatpush.msra.mxu1 %v134_v24 }
  0x34   :  { %489 = vmatpush.msra.mxu2 %v133_v25  ;;  %490 = vmatpush.msra.mxu3 %v133_v25 }
  0x35   :  { %180 = vmatpush.msra.mxu0 %v133_v25  ;;  %488 = vmatpush.msra.mxu1 %v133_v25 }
  0x36   :  { %492 = vmatpush.msra.mxu2 %v132_v26  ;;  %493 = vmatpush.msra.mxu3 %v132_v26 }
  0x37   :  { %181 = vmatpush.msra.mxu0 %v132_v26  ;;  %491 = vmatpush.msra.mxu1 %v132_v26 }
  0x38   :  { %495 = vmatpush.msra.mxu2 %v131_v27  ;;  %496 = vmatpush.msra.mxu3 %v131_v27 }
  0x39   :  { %182 = vmatpush.msra.mxu0 %v131_v27  ;;  %494 = vmatpush.msra.mxu1 %v131_v27 }
  0x3a   :  { %498 = vmatpush.msra.mxu2 %v130_v28  ;;  %499 = vmatpush.msra.mxu3 %v130_v28 }
  0x3b   :  { %183 = vmatpush.msra.mxu0 %v130_v28  ;;  %497 = vmatpush.msra.mxu1 %v130_v28 }
  0x3c   :  { %501 = vmatpush.msra.mxu2 %v129_v29  ;;  %502 = vmatpush.msra.mxu3 %v129_v29 }
  0x3d   :  { %184 = vmatpush.msra.mxu0 %v129_v29  ;;  %500 = vmatpush.msra.mxu1 %v129_v29 }
  0x3e   :  { %504 = vmatpush.msra.mxu2 %v128_v30  ;;  %505 = vmatpush.msra.mxu3 %v128_v30 }
  0x3f   :  { %185 = vmatpush.msra.mxu0 %v128_v30  ;;  %503 = vmatpush.msra.mxu1 %v128_v30 }
  0x40   :  { %507 = vmatpush.msra.mxu2 %v127_v31  ;;  %508 = vmatpush.msra.mxu3 %v127_v31 }
  0x41   :  { %199 = vmatmul.f32.vlgmr.msra.gmra.mxu2 %v164_v32  ;;  %205 = vmatmul.f32.vlgmr.msra.gmra.mxu3 %v166_v33 }
  0x42   :  { %186 = vmatpush.msra.mxu0 %v127_v31  ;;  %506 = vmatpush.msra.mxu1 %v127_v31 }
  0x43   :  { %187 = vmatmul.f32.vlgmr.msra.gmra.mxu0 %v160_v34  ;;  %193 = vmatmul.f32.vlgmr.msra.gmra.mxu1 %v162_v35 }
  0x49   :  { %202 = vmatmul.f32.gmra.mxu2 %v165_v36  ;;  %208 = vmatmul.f32.gmra.mxu3 %v167_v37 }
  0x4b   :  { %190 = vmatmul.f32.gmra.mxu0 %v161_v38  ;;  %196 = vmatmul.f32.gmra.mxu1 %v163_v39 }
  0xc0   :  { %v188_v41 = vpop.f32.mrf.mxu0  ;;  %v194_v42 = vpop.f32.mrf.mxu1 }
  0xc1   :  { %v189_v43 = vadd.f32 %v598_v40, %v188_v41  ;;  %v195_v44 = vadd.f32 %v598_v40, %v194_v42 }
  0xc3   :  { %212 = vst [vmem:[#allocation2] sm:$0xff] %v189_v43 }
  0xc4   :  { %214 = vst [vmem:[#allocation2 + $0x10] sm:$0xff] %v195_v44  ;;  %v200_v45 = vpop.f32.mrf.mxu2  ;;  %v206_v46 = vpop.f32.mrf.mxu3 }
  0xc5   :  { %v201_v47 = vadd.f32 %v598_v40, %v200_v45  ;;  %v207_v48 = vadd.f32 %v598_v40, %v206_v46 }
  0xc7   :  { %216 = vst [vmem:[#allocation2 + $0x20] sm:$0xff] %v201_v47 }
  0xc8   :  { %218 = vst [vmem:[#allocation2 + $0x30] sm:$0xff] %v207_v48  ;;  %v191_v49 = vpop.f32.mrf.mxu0  ;;  %v197_v50 = vpop.f32.mrf.mxu1 }
  0xc9   :  { %v192_v51 = vadd.f32 %v598_v40, %v191_v49  ;;  %v198_v52 = vadd.f32 %v598_v40, %v197_v50 }
  0xcb   :  { %213 = vst [vmem:[#allocation2 + $0x8] sm:$0xff] %v192_v51 }
  0xcc   :  { %215 = vst [vmem:[#allocation2 + $0x18] sm:$0xff] %v198_v52  ;;  %v203_v53 = vpop.f32.mrf.mxu2  ;;  %v209_v54 = vpop.f32.mrf.mxu3 }
  0xcd   :  { %v204_v55 = vadd.f32 %v598_v40, %v203_v53  ;;  %v210_v56 = vadd.f32 %v598_v40, %v209_v54 }
  0xcf   :  { %217 = vst [vmem:[#allocation2 + $0x28] sm:$0xff] %v204_v55 }
  0xd0   :  { %219 = vst [vmem:[#allocation2 + $0x38] sm:$0xff] %v210_v56 }
  0xd1 LB: > { %230 = vmatpush.msra.mxu0 %v940_v15  ;;  %s459_s16 = sshll.u32 %s805_s3, 3  ;;  %s225_s3 = sadd.s32 1, %s805_s3   ;;  %s805_s3 = sphi %s945_s3, %s225_s3   ;;  %v801_v57 = vphi %v799_v57, %v600_v57  }
  0xd2   : > { %s228_s17 = scalar_lea.vmem [#allocation2], %s459_s16  ;;  %p222_p0 = scmp.ge.s32.totalorder %s225_s3, 8  }
  0xd3   : > { %231 = vmatpush.msra.mxu0 %v938_v14  ;;  %v268_v61 = vld [vmem:[#allocation9 + $0x78] sm:$0xff] (%p222_p0)  ;;  %v267_v62 = vld [vmem:[#allocation9 + $0x70] sm:$0xff] (%p222_p0)  ;;  %v266_v63 = vld [vmem:[#allocation9 + $0x68] sm:$0xff] (%p222_p0)  ;;  %v807_v54 = vmov (%p222_p0), 0.0  }
  0xd4   :  { %510 = vmatpush.msra.mxu2 (%p222_p0), %v268_v61  ;;  %511 = vmatpush.msra.mxu3 (%p222_p0), %v268_v61  ;;  %v970_v16 = vld [vmem:[#allocation11] sm:$0xff] (%p222_p0)  ;;  %v972_v17 = vld [vmem:[#allocation11 + $0x8] sm:$0xff] (%p222_p0)  ;;  %v974_v18 = vld [vmem:[#allocation11 + $0x10] sm:$0xff] (%p222_p0) }
  0xd5   : > { %232 = vmatpush.msra.mxu0 %v936_v13  ;;  %v976_v19 = vld [vmem:[#allocation11 + $0x18] sm:$0xff] (%p222_p0)  ;;  %v978_v20 = vld [vmem:[#allocation11 + $0x20] sm:$0xff] (%p222_p0)  ;;  %v980_v21 = vld [vmem:[#allocation11 + $0x28] sm:$0xff] (%p222_p0)  ;;  %509 = vmatpush.msra.mxu1 (%p222_p0), %v268_v61 }
  0xd6   :  { %513 = vmatpush.msra.mxu2 (%p222_p0), %v267_v62  ;;  %514 = vmatpush.msra.mxu3 (%p222_p0), %v267_v62  ;;  %v262_v13 = vld [vmem:[#allocation9 + $0x48] sm:$0xff] (%p222_p0)  ;;  %v261_v14 = vld [vmem:[#allocation9 + $0x40] sm:$0xff] (%p222_p0)  ;;  %v260_v15 = vld [vmem:[#allocation9 + $0x38] sm:$0xff] (%p222_p0) }
  0xd7   : > { %233 = vmatpush.msra.mxu0 %v934_v12  ;;  %v229_v58 = vld [vmem:[%s228_s17] sm:$0xff]  ;;  %512 = vmatpush.msra.mxu1 (%p222_p0), %v267_v62  ;;  %v263_v12 = vld [vmem:[#allocation9 + $0x50] sm:$0xff] (%p222_p0)  ;;  %v258_v23 = vld [vmem:[#allocation9 + $0x28] sm:$0xff] (%p222_p0) }
  0xd8   :  { %516 = vmatpush.msra.mxu2 (%p222_p0), %v266_v63  ;;  %517 = vmatpush.msra.mxu3 (%p222_p0), %v266_v63  ;;  %v259_v22 = vld [vmem:[#allocation9 + $0x30] sm:$0xff] (%p222_p0)  ;;  %v257_v24 = vld [vmem:[#allocation9 + $0x20] sm:$0xff] (%p222_p0)  ;;  %v256_v25 = vld [vmem:[#allocation9 + $0x18] sm:$0xff] (%p222_p0) }
  0xd9   : > { %234 = vmatpush.msra.mxu0 %v932_v11  ;;  %v264_v11 = vld [vmem:[#allocation9 + $0x58] sm:$0xff] (%p222_p0)  ;;  %515 = vmatpush.msra.mxu1 (%p222_p0), %v266_v63  ;;  %v255_v26 = vld [vmem:[#allocation9 + $0x10] sm:$0xff] (%p222_p0)  ;;  %v254_v27 = vld [vmem:[#allocation9 + $0x8] sm:$0xff] (%p222_p0) }
  0xda   :  { %v253_v28 = vld [vmem:[#allocation9] sm:$0xff] (%p222_p0) }
  0xdb   : > { %235 = vmatpush.msra.mxu0 %v930_v10  ;;  %v265_v10 = vld [vmem:[#allocation9 + $0x60] sm:$0xff] (%p222_p0) }
  0xdc   :  { %519 = vmatpush.msra.mxu2 (%p222_p0), %v265_v10  ;;  %520 = vmatpush.msra.mxu3 (%p222_p0), %v265_v10  ;;  %v601_v37 = vld [vmem:[%s1038_s6] ss:$0 sm:$0xff] (%p222_p0)  ;;  %s1005_s6 = smov (%p222_p0), 0  }
  0xdd   : > { %236 = vmatpush.msra.mxu0 %v928_v9  ;;  %v1000_v9 = vld [vmem:[#allocation11 + $0x78] sm:$0xff] (%p222_p0)  ;;  %518 = vmatpush.msra.mxu1 (%p222_p0), %v265_v10 }
  0xde   :  { %522 = vmatpush.msra.mxu2 (%p222_p0), %v264_v11  ;;  %523 = vmatpush.msra.mxu3 (%p222_p0), %v264_v11 }
  0xdf   : > { %237 = vmatpush.msra.mxu0 %v926_v8  ;;  %v998_v8 = vld [vmem:[#allocation11 + $0x70] sm:$0xff] (%p222_p0)  ;;  %521 = vmatpush.msra.mxu1 (%p222_p0), %v264_v11 }
  0xe0   :  { %525 = vmatpush.msra.mxu2 (%p222_p0), %v263_v12  ;;  %526 = vmatpush.msra.mxu3 (%p222_p0), %v263_v12 }
  0xe1   : > { %238 = vmatpush.msra.mxu0 %v924_v7  ;;  %v996_v7 = vld [vmem:[#allocation11 + $0x68] sm:$0xff] (%p222_p0)  ;;  %524 = vmatpush.msra.mxu1 (%p222_p0), %v263_v12 }
  0xe2   :  { %528 = vmatpush.msra.mxu2 (%p222_p0), %v262_v13  ;;  %529 = vmatpush.msra.mxu3 (%p222_p0), %v262_v13 }
  0xe3   : > { %239 = vmatpush.msra.mxu0 %v922_v6  ;;  %v994_v6 = vld [vmem:[#allocation11 + $0x60] sm:$0xff] (%p222_p0)  ;;  %527 = vmatpush.msra.mxu1 (%p222_p0), %v262_v13 }
  0xe4   :  { %531 = vmatpush.msra.mxu2 (%p222_p0), %v261_v14  ;;  %532 = vmatpush.msra.mxu3 (%p222_p0), %v261_v14 }
  0xe5   : > { %240 = vmatpush.msra.mxu0 %v920_v5  ;;  %v992_v5 = vld [vmem:[#allocation11 + $0x58] sm:$0xff] (%p222_p0)  ;;  %530 = vmatpush.msra.mxu1 (%p222_p0), %v261_v14 }
  0xe6   :  { %534 = vmatpush.msra.mxu2 (%p222_p0), %v260_v15  ;;  %535 = vmatpush.msra.mxu3 (%p222_p0), %v260_v15 }
  0xe7   : > { %241 = vmatpush.msra.mxu0 %v918_v4  ;;  %v990_v4 = vld [vmem:[#allocation11 + $0x50] sm:$0xff] (%p222_p0)  ;;  %533 = vmatpush.msra.mxu1 (%p222_p0), %v260_v15 }
  0xe8   :  { %537 = vmatpush.msra.mxu2 (%p222_p0), %v259_v22  ;;  %538 = vmatpush.msra.mxu3 (%p222_p0), %v259_v22 }
  0xe9   : > { %242 = vmatpush.msra.mxu0 %v916_v3  ;;  %v988_v3 = vld [vmem:[#allocation11 + $0x48] sm:$0xff] (%p222_p0)  ;;  %536 = vmatpush.msra.mxu1 (%p222_p0), %v259_v22 }
  0xea   :  { %540 = vmatpush.msra.mxu2 (%p222_p0), %v258_v23  ;;  %541 = vmatpush.msra.mxu3 (%p222_p0), %v258_v23 }
  0xeb   : > { %243 = vmatpush.msra.mxu0 %v914_v2  ;;  %v986_v2 = vld [vmem:[#allocation11 + $0x40] sm:$0xff] (%p222_p0)  ;;  %539 = vmatpush.msra.mxu1 (%p222_p0), %v258_v23 }
  0xec   :  { %543 = vmatpush.msra.mxu2 (%p222_p0), %v257_v24  ;;  %544 = vmatpush.msra.mxu3 (%p222_p0), %v257_v24 }
  0xed   : > { %244 = vmatpush.msra.mxu0 %v912_v1  ;;  %v984_v1 = vld [vmem:[#allocation11 + $0x38] sm:$0xff] (%p222_p0)  ;;  %542 = vmatpush.msra.mxu1 (%p222_p0), %v257_v24 }
  0xee   :  { %546 = vmatpush.msra.mxu2 (%p222_p0), %v256_v25  ;;  %547 = vmatpush.msra.mxu3 (%p222_p0), %v256_v25 }
  0xef   : > { %245 = vmatpush.msra.mxu0 %v910_v0  ;;  %v982_v0 = vld [vmem:[#allocation11 + $0x30] sm:$0xff] (%p222_p0)  ;;  %545 = vmatpush.msra.mxu1 (%p222_p0), %v256_v25 }
  0xf0   : > { %246 = vmatmul.f32.vlgmr.msra.gmra.mxu0 %v801_v57  ;;  %549 = vmatpush.msra.mxu2 (%p222_p0), %v255_v26 }
  0xf1   :  { %297 = vmatpush.msra.mxu0 (%p222_p0), %v268_v61  ;;  %550 = vmatpush.msra.mxu3 (%p222_p0), %v255_v26 }
  0xf2   :  { %548 = vmatpush.msra.mxu1 (%p222_p0), %v255_v26  ;;  %552 = vmatpush.msra.mxu2 (%p222_p0), %v254_v27 }
  0xf3   :  { %298 = vmatpush.msra.mxu0 (%p222_p0), %v267_v62  ;;  %553 = vmatpush.msra.mxu3 (%p222_p0), %v254_v27 }
  0xf4   :  { %551 = vmatpush.msra.mxu1 (%p222_p0), %v254_v27  ;;  %555 = vmatpush.msra.mxu2 (%p222_p0), %v253_v28 }
  0xf5   :  { %299 = vmatpush.msra.mxu0 (%p222_p0), %v266_v63  ;;  %556 = vmatpush.msra.mxu3 (%p222_p0), %v253_v28 }
  0xf6   :  { %554 = vmatpush.msra.mxu1 (%p222_p0), %v253_v28 }
  0xf7   :  { %300 = vmatpush.msra.mxu0 (%p222_p0), %v265_v10 }
  0xf9   :  { %301 = vmatpush.msra.mxu0 (%p222_p0), %v264_v11 }
  0xfb   :  { %302 = vmatpush.msra.mxu0 (%p222_p0), %v263_v12 }
  0xfd   :  { %303 = vmatpush.msra.mxu0 (%p222_p0), %v262_v13 }
  0xff   :  { %304 = vmatpush.msra.mxu0 (%p222_p0), %v261_v14 }
 0x101   :  { %305 = vmatpush.msra.mxu0 (%p222_p0), %v260_v15 }
 0x103   :  { %306 = vmatpush.msra.mxu0 (%p222_p0), %v259_v22 }
 0x105   :  { %307 = vmatpush.msra.mxu0 (%p222_p0), %v258_v23 }
 0x107   :  { %308 = vmatpush.msra.mxu0 (%p222_p0), %v257_v24 }
 0x109   :  { %309 = vmatpush.msra.mxu0 (%p222_p0), %v256_v25 }
 0x10b   :  { %310 = vmatpush.msra.mxu0 (%p222_p0), %v255_v26 }
 0x10d   :  { %311 = vmatpush.msra.mxu0 (%p222_p0), %v254_v27 }
 0x10f   :  { %312 = vmatpush.msra.mxu0 (%p222_p0), %v253_v28 }
 0x16d   : > { %v247_v59 = vpop.f32.mrf.mxu0 }
 0x16e   : > { %v250_v60 = vadd.f32 %v247_v59, %v229_v58 }
 0x170   : > { %599 = vtanh.f32 %v250_v60 }
 0x173   :  { %224 = sbr.rel (!%p222_p0) target bundleno = 209 (0xd1), region = 96 }
 0x176   : > { %v600_v57 = vpop.eup %599  }
 0x177   : > { %252 = vst [vmem:[%s228_s17] sm:$0xff] %v600_v57 }
 0x17e   :  { %v290_v29 = vld [vmem:[#allocation2 + $0x20] sm:$0xff]  ;;  %v292_v30 = vld [vmem:[#allocation2 + $0x30] sm:$0xff]  ;;  %v291_v33 = vld [vmem:[#allocation2 + $0x28] sm:$0xff] }
 0x17f   :  { %v286_v31 = vld [vmem:[#allocation2] sm:$0xff]  ;;  %v288_v32 = vld [vmem:[#allocation2 + $0x10] sm:$0xff]  ;;  %325 = vmatmul.f32.vlgmr.msra.gmra.mxu2 %v290_v29  ;;  %331 = vmatmul.f32.vlgmr.msra.gmra.mxu3 %v292_v30  ;;  %v293_v34 = vld [vmem:[#allocation2 + $0x38] sm:$0xff] }
 0x180   :  { %313 = vmatmul.f32.vlgmr.msra.gmra.mxu0 %v286_v31  ;;  %319 = vmatmul.f32.vlgmr.msra.gmra.mxu1 %v288_v32  ;;  %v287_v35 = vld [vmem:[#allocation2 + $0x8] sm:$0xff]  ;;  %v289_v36 = vld [vmem:[#allocation2 + $0x18] sm:$0xff] }
 0x187   :  { %328 = vmatmul.f32.gmra.mxu2 %v291_v33  ;;  %334 = vmatmul.f32.gmra.mxu3 %v293_v34 }
 0x188   :  { %316 = vmatmul.f32.gmra.mxu0 %v287_v35  ;;  %322 = vmatmul.f32.gmra.mxu1 %v289_v36 }
 0x1fd   :  { %v314_v38 = vpop.f32.mrf.mxu0  ;;  %v320_v39 = vpop.f32.mrf.mxu1 }
 0x1fe   :  { %v315_v40 = vadd.f32 %v601_v37, %v314_v38  ;;  %v321_v41 = vadd.f32 %v601_v37, %v320_v39 }
 0x200   :  { %338 = vst [vmem:[#allocation2] sm:$0xff] %v315_v40 }
 0x201   :  { %340 = vst [vmem:[#allocation2 + $0x10] sm:$0xff] %v321_v41 }
 0x202   :  { %v326_v42 = vpop.f32.mrf.mxu2  ;;  %v332_v43 = vpop.f32.mrf.mxu3 }
 0x203   :  { %v327_v44 = vadd.f32 %v601_v37, %v326_v42  ;;  %v333_v45 = vadd.f32 %v601_v37, %v332_v43 }
 0x205   :  { %342 = vst [vmem:[#allocation2 + $0x20] sm:$0xff] %v327_v44  ;;  %v317_v46 = vpop.f32.mrf.mxu0  ;;  %v323_v47 = vpop.f32.mrf.mxu1 }
 0x206   :  { %344 = vst [vmem:[#allocation2 + $0x30] sm:$0xff] %v333_v45  ;;  %v318_v48 = vadd.f32 %v601_v37, %v317_v46  ;;  %v324_v49 = vadd.f32 %v601_v37, %v323_v47 }
 0x208   :  { %339 = vst [vmem:[#allocation2 + $0x8] sm:$0xff] %v318_v48 }
 0x209   :  { %341 = vst [vmem:[#allocation2 + $0x18] sm:$0xff] %v324_v49 }
 0x20a   :  { %v329_v50 = vpop.f32.mrf.mxu2  ;;  %v335_v51 = vpop.f32.mrf.mxu3 }
 0x20b   :  { %v330_v52 = vadd.f32 %v601_v37, %v329_v50  ;;  %v336_v53 = vadd.f32 %v601_v37, %v335_v51 }
 0x20d   :  { %343 = vst [vmem:[#allocation2 + $0x28] sm:$0xff] %v330_v52 }
 0x20e   :  { %345 = vst [vmem:[#allocation2 + $0x38] sm:$0xff] %v336_v53 }
 0x20f LB: > { %356 = vmatpush.msra.mxu0 %v1000_v9  ;;  %s460_s20 = sshll.u32 %s813_s6, 3  ;;  %s351_s6 = sadd.s32 1, %s813_s6   ;;  %s813_s6 = sphi %s1005_s6, %s351_s6   ;;  %v809_v54 = vphi %v807_v54, %v808_v54  }
 0x210   : > { %s354_s21 = scalar_lea.vmem [#allocation2], %s460_s20  ;;  %p348_p1 = scmp.ge.s32.totalorder %s351_s6, 8  }
 0x211   : > { %357 = vmatpush.msra.mxu0 %v998_v8  ;;  %v393_v59 = vld [vmem:[#allocation12 + $0x78] sm:$0xff] (%p348_p1)  ;;  %v392_v60 = vld [vmem:[#allocation12 + $0x70] sm:$0xff] (%p348_p1)  ;;  %v391_v61 = vld [vmem:[#allocation12 + $0x68] sm:$0xff] (%p348_p1)  ;;  %s823_s4 = smov (%p348_p1), [#allocation14]   ;;  %s426_s26 = sshll.u32 (%p348_p1), %s1041_s9, 4  ;;  %s427_s26 = int_to_ptr.hbm [resolvable:$true] %s426_s26 }
 0x212   :  { %v390_v62 = vld [vmem:[#allocation12 + $0x60] sm:$0xff] (%p348_p1)  ;;  %v389_v63 = vld [vmem:[#allocation12 + $0x58] sm:$0xff] (%p348_p1)  ;;  %v388_v10 = vld [vmem:[#allocation12 + $0x50] sm:$0xff] (%p348_p1)  ;;  %s424_s23 = sshll.u32 (%p348_p1), %s823_s4, 4  ;;  %s425_s23 = int_to_ptr.vmem [resolvable:$true] %s424_s23 }
 0x213   : > { %358 = vmatpush.msra.mxu0 %v996_v7  ;;  %v387_v11 = vld [vmem:[#allocation12 + $0x48] sm:$0xff] (%p348_p1)  ;;  %v386_v12 = vld [vmem:[#allocation12 + $0x40] sm:$0xff] (%p348_p1)  ;;  %v385_v13 = vld [vmem:[#allocation12 + $0x38] sm:$0xff] (%p348_p1) }
 0x214   :  { %v384_v14 = vld [vmem:[#allocation12 + $0x30] sm:$0xff] (%p348_p1)  ;;  %v383_v15 = vld [vmem:[#allocation12 + $0x28] sm:$0xff] (%p348_p1) }
 0x215   : > { %359 = vmatpush.msra.mxu0 %v994_v6  ;;  %v355_v55 = vld [vmem:[%s354_s21] sm:$0xff] }
 0x217   : > { %360 = vmatpush.msra.mxu0 %v992_v5 }
 0x219   : > { %361 = vmatpush.msra.mxu0 %v990_v4 }
 0x21b   : > { %362 = vmatpush.msra.mxu0 %v988_v3 }
 0x21d   : > { %363 = vmatpush.msra.mxu0 %v986_v2 }
 0x21f   : > { %364 = vmatpush.msra.mxu0 %v984_v1 }
 0x221   : > { %365 = vmatpush.msra.mxu0 %v982_v0 }
 0x223   : > { %366 = vmatpush.msra.mxu0 %v980_v21  ;;  %v604_v21 = vld [vmem:[%s1040_s8] ss:$0 sm:$0xff] (%p348_p1) }
 0x225   : > { %367 = vmatpush.msra.mxu0 %v978_v20  ;;  %v378_v20 = vld [vmem:[#allocation12] sm:$0xff] (%p348_p1) }
 0x227   : > { %368 = vmatpush.msra.mxu0 %v976_v19  ;;  %v379_v19 = vld [vmem:[#allocation12 + $0x8] sm:$0xff] (%p348_p1) }
 0x229   : > { %369 = vmatpush.msra.mxu0 %v974_v18  ;;  %v380_v18 = vld [vmem:[#allocation12 + $0x10] sm:$0xff] (%p348_p1) }
 0x22b   : > { %370 = vmatpush.msra.mxu0 %v972_v17  ;;  %v381_v17 = vld [vmem:[#allocation12 + $0x18] sm:$0xff] (%p348_p1) }
 0x22d   : > { %371 = vmatpush.msra.mxu0 %v970_v16  ;;  %v382_v16 = vld [vmem:[#allocation12 + $0x20] sm:$0xff] (%p348_p1) }
 0x22e   : > { %372 = vmatmul.f32.vlgmr.msra.gmra.mxu0 %v809_v54 }
 0x22f   :  { %398 = vmatpush.msra.mxu0 (%p348_p1), %v393_v59 }
 0x231   :  { %399 = vmatpush.msra.mxu0 (%p348_p1), %v392_v60 }
 0x233   :  { %400 = vmatpush.msra.mxu0 (%p348_p1), %v391_v61 }
 0x235   :  { %401 = vmatpush.msra.mxu0 (%p348_p1), %v390_v62 }
 0x237   :  { %402 = vmatpush.msra.mxu0 (%p348_p1), %v389_v63 }
 0x239   :  { %403 = vmatpush.msra.mxu0 (%p348_p1), %v388_v10 }
 0x23b   :  { %404 = vmatpush.msra.mxu0 (%p348_p1), %v387_v11 }
 0x23d   :  { %405 = vmatpush.msra.mxu0 (%p348_p1), %v386_v12 }
 0x23f   :  { %406 = vmatpush.msra.mxu0 (%p348_p1), %v385_v13 }
 0x241   :  { %407 = vmatpush.msra.mxu0 (%p348_p1), %v384_v14 }
 0x243   :  { %408 = vmatpush.msra.mxu0 (%p348_p1), %v383_v15 }
 0x245   :  { %409 = vmatpush.msra.mxu0 (%p348_p1), %v382_v16 }
 0x247   :  { %410 = vmatpush.msra.mxu0 (%p348_p1), %v381_v17 }
 0x249   :  { %411 = vmatpush.msra.mxu0 (%p348_p1), %v380_v18 }
 0x24b   :  { %412 = vmatpush.msra.mxu0 (%p348_p1), %v379_v19 }
 0x24d   :  { %413 = vmatpush.msra.mxu0 (%p348_p1), %v378_v20 }
 0x2ab   : > { %v373_v56 = vpop.f32.mrf.mxu0 }
 0x2ac   : > { %v376_v57 = vadd.f32 %v373_v56, %v355_v55 }
 0x2ae   : > { %602 = vtanh.f32 %v376_v57 }
 0x2b1   :  { %350 = sbr.rel (!%p348_p1) target bundleno = 527 (0x20f), region = 107 }
 0x2b4   : > { %v603_v58 = vpop.eup %602  }
 0x2b5   : > { %v808_v54 = vmov %v603_v58   ;;  %414 = vmatmul.f32.vlgmr.msra.gmra.mxu0 (%p348_p1), %v603_v58 }
 0x332   :  { %v415_v0 = vpop.f32.mrf.mxu0 }
 0x333   :  { %v416_v1 = vadd.f32 %v604_v21, %v415_v0 }
 0x335   :  { %418 = vst [vmem:[#allocation14] sm:$0xff] %v416_v1 }
 0x336   :  { %429 = dma.vmem_to_hbm [thread:$0]  %s425_s23, 128, %s427_s26, [#allocation5]  }
 0x337   :  { %797 = dma.done.wait [#allocation5], 128  }
 0x338   :  { %798 = vsyncadd [#allocation5], 4294967168 }
 0x339   :  { %434 = vsyncpa [#allocation4], 1 }
 0x33a   :  { %435 = vsyncpa [#allocation7], 1 }
 0x33b   :  { %436 = vsyncpa [#allocation10], 1 }
 0x33c   :  { %437 = vsyncpa [#allocation13], 1 }
 0x33d   :  { %438 = vsyncpa [#allocation5], 1 }

</bundles_post_ra>
